<compile_context>
chip_gen: v5e
topology: v5e:2x2
jax: 0.10.0
libtpu: 0.0.40
codegen_flags: <defaults>
</compile_context>

<pallas_src>
import functools

import jax
import jax.numpy as jnp
from jax.experimental import pallas as pl
from jax.experimental.pallas import tpu as pltpu


def _clas_encoder_kernel(obs_ref, act_ref,
                         w1o_ref, w1a_ref, b1_ref,
                         w2_ref, b2_ref,
                         w3_ref, b3_ref,
                         wh_ref, bh_ref,
                         out_ref):
    bf16 = jnp.bfloat16
    f32 = jnp.float32

    # Layer 1: split-input matmul (obs + actions), no concat needed.
    h = (jnp.dot(obs_ref[...].astype(bf16), w1o_ref[...], preferred_element_type=f32)
         + jnp.dot(act_ref[...].astype(bf16), w1a_ref[...], preferred_element_type=f32)
         + b1_ref[...])
    h = jnp.maximum(h, 0.0)

    # Layers 2 & 3: bf16 MXU inputs, f32 accumulate, f32 elementwise.
    h = jnp.dot(h.astype(bf16), w2_ref[...], preferred_element_type=f32) + b2_ref[...]
    h = jnp.maximum(h, 0.0)
    h = jnp.dot(h.astype(bf16), w3_ref[...], preferred_element_type=f32) + b3_ref[...]
    h = jnp.maximum(h, 0.0)

    # Fused heads: one matmul produces [bt, 2L] = mu || logvar.
    heads = jnp.dot(h.astype(bf16), wh_ref[...], preferred_element_type=f32) + bh_ref[...]

    # Clamp only the logvar half (lanes >= L) via a lane mask — pure VPU.
    two_l = out_ref.shape[-1]
    lane = jax.lax.broadcasted_iota(jnp.int32, heads.shape, dimension=1)
    clipped = jnp.clip(heads, -10.0, 2.0)
    out = jnp.where(lane >= (two_l // 2), clipped, heads)
    out_ref[...] = out.astype(out_ref.dtype)


@functools.partial(jax.jit, static_argnames=("max_batch_tile",))
def clas_encoder_forward(obs, actions, params, *, max_batch_tile=256):
    """obs: [B, obs_dim], actions: [B, action_dim] -> (mu [B, L], logvar [B, L])."""
    B, obs_dim = obs.shape
    action_dim = actions.shape[-1]
    H = params["w2"].shape[0]
    two_l = params["w_heads"].shape[1]
    latent_dim = two_l // 2

    # Batch tiling: single tile for small batches; fixed-size tiles (parallel
    # grid -> both v7x TensorCores) for large batches, padding the remainder.
    if B <= max_batch_tile:
        bt = B
        padded_b = B
    else:
        bt = max_batch_tile
        padded_b = pl.cdiv(B, bt) * bt
        if padded_b != B:
            obs = jnp.pad(obs, ((0, padded_b - B), (0, 0)))
            actions = jnp.pad(actions, ((0, padded_b - B), (0, 0)))
    grid = (padded_b // bt,)

    def row_spec(cols):
        return pl.BlockSpec((bt, cols), lambda i: (i, 0))

    def rep_spec(rows, cols):
        # Same block every grid step -> stays VMEM-resident (no re-DMA).
        return pl.BlockSpec((rows, cols), lambda i: (0, 0))

    in_specs = [
        row_spec(obs_dim),
        row_spec(action_dim),
        rep_spec(obs_dim, H), rep_spec(action_dim, H), rep_spec(1, H),
        rep_spec(H, H), rep_spec(1, H),
        rep_spec(H, H), rep_spec(1, H),
        rep_spec(H, two_l), rep_spec(1, two_l),
    ]
    out_specs = pl.BlockSpec((bt, two_l), lambda i: (i, 0))

    operands = (obs, actions,
                params["w1_obs"], params["w1_act"], params["b1"],
                params["w2"], params["b2"],
                params["w3"], params["b3"],
                params["w_heads"], params["b_heads"])

    flops = 2 * padded_b * (obs_dim * H + action_dim * H + 2 * H * H + H * two_l)
    bytes_accessed = sum(int(a.size) * a.dtype.itemsize for a in operands)
    bytes_accessed += padded_b * two_l * 4  # fused f32 output

    fused = pl.pallas_call(
        _clas_encoder_kernel,
        out_shape=jax.ShapeDtypeStruct((padded_b, two_l), jnp.float32),
        grid=grid,
        in_specs=in_specs,
        out_specs=out_specs,
        compiler_params=pltpu.CompilerParams(dimension_semantics=("parallel",)),
        cost_estimate=pl.CostEstimate(flops=flops, transcendentals=0,
                                      bytes_accessed=bytes_accessed),
    )(*operands)

    fused = fused[:B]
    mu = fused[:, :latent_dim]
    logvar = fused[:, latent_dim:]
    return mu, logvar


def init_clas_encoder_params(key, obs_dim, action_dim, latent_dim, hidden_dim):
    """PyTorch nn.Linear-style init (U(-1/sqrt(fan_in), 1/sqrt(fan_in))),
    logvar bias = -5.0. Weights stored as bf16 (MXU-native), biases as f32."""
    input_dim = obs_dim + action_dim

    def linear(k, fan_in, fan_out):
        kw, kb = jax.random.split(k)
        bound = fan_in ** -0.5
        w = jax.random.uniform(kw, (fan_in, fan_out), jnp.float32, -bound, bound)
        b = jax.random.uniform(kb, (1, fan_out), jnp.float32, -bound, bound)
        return w, b

    k1, k2, k3, k4, k5 = jax.random.split(key, 5)
    w1, b1 = linear(k1, input_dim, hidden_dim)
    w2, b2 = linear(k2, hidden_dim, hidden_dim)
    w3, b3 = linear(k3, hidden_dim, hidden_dim)
    wmu, bmu = linear(k4, hidden_dim, latent_dim)
    wlv, _ = linear(k5, hidden_dim, latent_dim)
    blv = jnp.full((1, latent_dim), -5.0, jnp.float32)  # nn.init.constant_(bias, -5.0)

    def bf16(a):
        return a.astype(jnp.bfloat16)

    return dict(
        w1_obs=bf16(w1[:obs_dim]), w1_act=bf16(w1[obs_dim:]), b1=b1,
        w2=bf16(w2), b2=b2,
        w3=bf16(w3), b3=b3,
        w_heads=bf16(jnp.concatenate([wmu, wlv], axis=1)),   # mu || logvar fused
        b_heads=jnp.concatenate([bmu, blv], axis=1),
    )


def _reference_forward(obs, actions, p):
    """Pure-JAX reference of the same math / precision (bf16 MXU inputs,
    f32 accumulation) for correctness checking."""
    bf16, f32 = jnp.bfloat16, jnp.float32

    def mm(x, w):
        return jnp.dot(x.astype(bf16), w, preferred_element_type=f32)

    h = jax.nn.relu(mm(obs, p["w1_obs"]) + mm(actions, p["w1_act"]) + p["b1"])
    h = jax.nn.relu(mm(h, p["w2"]) + p["b2"])
    h = jax.nn.relu(mm(h, p["w3"]) + p["b3"])
    heads = mm(h, p["w_heads"]) + p["b_heads"]
    L = p["w_heads"].shape[1] // 2
    mu = heads[:, :L]
    logvar = jnp.clip(heads[:, L:], -10.0, 2.0)
    return mu, logvar


def _check(obs, actions, params, latent_dim, tile):
    mu, logvar = clas_encoder_forward(obs, actions, params, max_batch_tile=tile)
    jax.block_until_ready((mu, logvar))
    mu_ref, logvar_ref = _reference_forward(obs, actions, params)
    B = obs.shape[0]
    assert mu.shape == (B, latent_dim) and logvar.shape == (B, latent_dim)
    assert jnp.allclose(mu, mu_ref, atol=1e-2, rtol=1e-2), "mu mismatch"
    assert jnp.allclose(logvar, logvar_ref, atol=1e-2, rtol=1e-2), "logvar mismatch"
    assert bool(jnp.all(logvar <= 2.0)) and bool(jnp.all(logvar >= -10.0))


if __name__ == "__main__":
    # Small shapes consistent with the module's forward.
    obs_dim = 12
    action_dim = 4
    latent_dim = 8
    hidden_dim = 32

    root = jax.random.PRNGKey(0)
    k_params, k_obs, k_act = jax.random.split(root, 3)

    params = init_clas_encoder_params(k_params, obs_dim, action_dim,
                                      latent_dim, hidden_dim)

    # Path 1: tiny batch, single tile.
    obs = jax.random.normal(k_obs, (4, obs_dim), jnp.float32)
    actions = jax.random.normal(k_act, (4, action_dim), jnp.float32)
    _check(obs, actions, params, latent_dim, tile=256)

    # Path 2: gridded batch (exercises tiling + padding + parallel grid).
    obs_l = jax.random.normal(k_obs, (272, obs_dim), jnp.float32)
    act_l = jax.random.normal(k_act, (272, action_dim), jnp.float32)
    _check(obs_l, act_l, params, latent_dim, tile=128)

    print("KERNEL_OK")
</pallas_src>

<mosaic_0001>
module attributes {stable_mosaic.version = 11 : i64} {
  func.func @_clas_encoder_kernel(%arg0: i32, %arg1: memref<4x12xf32, #tpu.memory_space<vmem>>, %arg2: memref<4x4xf32, #tpu.memory_space<vmem>>, %arg3: memref<12x32xbf16, #tpu.memory_space<vmem>>, %arg4: memref<4x32xbf16, #tpu.memory_space<vmem>>, %arg5: memref<1x32xf32, #tpu.memory_space<vmem>>, %arg6: memref<32x32xbf16, #tpu.memory_space<vmem>>, %arg7: memref<1x32xf32, #tpu.memory_space<vmem>>, %arg8: memref<32x32xbf16, #tpu.memory_space<vmem>>, %arg9: memref<1x32xf32, #tpu.memory_space<vmem>>, %arg10: memref<32x16xbf16, #tpu.memory_space<vmem>>, %arg11: memref<1x16xf32, #tpu.memory_space<vmem>>, %arg12: memref<4x16xf32, #tpu.memory_space<vmem>>) attributes {dimension_semantics = [#tpu.dimension_semantics<parallel>], iteration_bounds = array<i64: 1>, scalar_prefetch = 0 : i64, scratch_operands = 0 : i64, tpu.core_type = #tpu.core_type<tc>, window_params = [{transform_indices = @transform_0, window_bounds = array<i64: 4, 12>}, {transform_indices = @transform_1, window_bounds = array<i64: 4, 4>}, {pipeline_mode = #tpu.pipeline_mode<synchronous>, transform_indices = @transform_2, window_bounds = array<i64: 12, 32>}, {pipeline_mode = #tpu.pipeline_mode<synchronous>, transform_indices = @transform_3, window_bounds = array<i64: 4, 32>}, {pipeline_mode = #tpu.pipeline_mode<synchronous>, transform_indices = @transform_4, window_bounds = array<i64: 1, 32>}, {pipeline_mode = #tpu.pipeline_mode<synchronous>, transform_indices = @transform_5, window_bounds = array<i64: 32, 32>}, {pipeline_mode = #tpu.pipeline_mode<synchronous>, transform_indices = @transform_6, window_bounds = array<i64: 1, 32>}, {pipeline_mode = #tpu.pipeline_mode<synchronous>, transform_indices = @transform_7, window_bounds = array<i64: 32, 32>}, {pipeline_mode = #tpu.pipeline_mode<synchronous>, transform_indices = @transform_8, window_bounds = array<i64: 1, 32>}, {pipeline_mode = #tpu.pipeline_mode<synchronous>, transform_indices = @transform_9, window_bounds = array<i64: 32, 16>}, {pipeline_mode = #tpu.pipeline_mode<synchronous>, transform_indices = @transform_10, window_bounds = array<i64: 1, 16>}, {transform_indices = @transform_11, window_bounds = array<i64: 4, 16>}]} {
    %c0 = arith.constant 0 : index
    %c0_0 = arith.constant 0 : index
    %0 = vector.load %arg1[%c0, %c0_0] : memref<4x12xf32, #tpu.memory_space<vmem>>, vector<4x12xf32>
    %1 = arith.truncf %0 : vector<4x12xf32> to vector<4x12xbf16>
    %c0_1 = arith.constant 0 : index
    %c0_2 = arith.constant 0 : index
    %2 = vector.load %arg3[%c0_1, %c0_2] : memref<12x32xbf16, #tpu.memory_space<vmem>>, vector<12x32xbf16>
    %cst = arith.constant dense<0.000000e+00> : vector<4x32xf32>
    %3 = tpu.matmul %1, %2, %cst {dimension_numbers = #tpu.dot_dimension_numbers<[1], [0], [0], [1], [0, 0, 1, 1], [], []>} : vector<4x12xbf16>, vector<12x32xbf16>, vector<4x32xf32> -> vector<4x32xf32>
    %c0_3 = arith.constant 0 : index
    %c0_4 = arith.constant 0 : index
    %4 = vector.load %arg2[%c0_3, %c0_4] : memref<4x4xf32, #tpu.memory_space<vmem>>, vector<4x4xf32>
    %5 = arith.truncf %4 : vector<4x4xf32> to vector<4x4xbf16>
    %c0_5 = arith.constant 0 : index
    %c0_6 = arith.constant 0 : index
    %6 = vector.load %arg4[%c0_5, %c0_6] : memref<4x32xbf16, #tpu.memory_space<vmem>>, vector<4x32xbf16>
    %cst_7 = arith.constant dense<0.000000e+00> : vector<4x32xf32>
    %7 = tpu.matmul %5, %6, %cst_7 {dimension_numbers = #tpu.dot_dimension_numbers<[1], [0], [0], [1], [0, 0, 1, 1], [], []>} : vector<4x4xbf16>, vector<4x32xbf16>, vector<4x32xf32> -> vector<4x32xf32>
    %8 = arith.addf %3, %7 : vector<4x32xf32>
    %c0_8 = arith.constant 0 : index
    %c0_9 = arith.constant 0 : index
    %9 = vector.load %arg5[%c0_8, %c0_9] : memref<1x32xf32, #tpu.memory_space<vmem>>, vector<1x32xf32>
    %10 = vector.broadcast %9 : vector<1x32xf32> to vector<4x32xf32>
    %11 = arith.addf %8, %10 : vector<4x32xf32>
    %cst_10 = arith.constant 0.000000e+00 : f32
    %12 = vector.broadcast %cst_10 : f32 to vector<4x32xf32>
    %13 = arith.maximumf %11, %12 : vector<4x32xf32>
    %14 = arith.truncf %13 : vector<4x32xf32> to vector<4x32xbf16>
    %c0_11 = arith.constant 0 : index
    %c0_12 = arith.constant 0 : index
    %15 = vector.load %arg6[%c0_11, %c0_12] : memref<32x32xbf16, #tpu.memory_space<vmem>>, vector<32x32xbf16>
    %cst_13 = arith.constant dense<0.000000e+00> : vector<4x32xf32>
    %16 = tpu.matmul %14, %15, %cst_13 {dimension_numbers = #tpu.dot_dimension_numbers<[1], [0], [0], [1], [0, 0, 1, 1], [], []>} : vector<4x32xbf16>, vector<32x32xbf16>, vector<4x32xf32> -> vector<4x32xf32>
    %c0_14 = arith.constant 0 : index
    %c0_15 = arith.constant 0 : index
    %17 = vector.load %arg7[%c0_14, %c0_15] : memref<1x32xf32, #tpu.memory_space<vmem>>, vector<1x32xf32>
    %18 = vector.broadcast %17 : vector<1x32xf32> to vector<4x32xf32>
    %19 = arith.addf %16, %18 : vector<4x32xf32>
    %cst_16 = arith.constant 0.000000e+00 : f32
    %20 = vector.broadcast %cst_16 : f32 to vector<4x32xf32>
    %21 = arith.maximumf %19, %20 : vector<4x32xf32>
    %22 = arith.truncf %21 : vector<4x32xf32> to vector<4x32xbf16>
    %c0_17 = arith.constant 0 : index
    %c0_18 = arith.constant 0 : index
    %23 = vector.load %arg8[%c0_17, %c0_18] : memref<32x32xbf16, #tpu.memory_space<vmem>>, vector<32x32xbf16>
    %cst_19 = arith.constant dense<0.000000e+00> : vector<4x32xf32>
    %24 = tpu.matmul %22, %23, %cst_19 {dimension_numbers = #tpu.dot_dimension_numbers<[1], [0], [0], [1], [0, 0, 1, 1], [], []>} : vector<4x32xbf16>, vector<32x32xbf16>, vector<4x32xf32> -> vector<4x32xf32>
    %c0_20 = arith.constant 0 : index
    %c0_21 = arith.constant 0 : index
    %25 = vector.load %arg9[%c0_20, %c0_21] : memref<1x32xf32, #tpu.memory_space<vmem>>, vector<1x32xf32>
    %26 = vector.broadcast %25 : vector<1x32xf32> to vector<4x32xf32>
    %27 = arith.addf %24, %26 : vector<4x32xf32>
    %cst_22 = arith.constant 0.000000e+00 : f32
    %28 = vector.broadcast %cst_22 : f32 to vector<4x32xf32>
    %29 = arith.maximumf %27, %28 : vector<4x32xf32>
    %30 = arith.truncf %29 : vector<4x32xf32> to vector<4x32xbf16>
    %c0_23 = arith.constant 0 : index
    %c0_24 = arith.constant 0 : index
    %31 = vector.load %arg10[%c0_23, %c0_24] : memref<32x16xbf16, #tpu.memory_space<vmem>>, vector<32x16xbf16>
    %cst_25 = arith.constant dense<0.000000e+00> : vector<4x16xf32>
    %32 = tpu.matmul %30, %31, %cst_25 {dimension_numbers = #tpu.dot_dimension_numbers<[1], [0], [0], [1], [0, 0, 1, 1], [], []>} : vector<4x32xbf16>, vector<32x16xbf16>, vector<4x16xf32> -> vector<4x16xf32>
    %c0_26 = arith.constant 0 : index
    %c0_27 = arith.constant 0 : index
    %33 = vector.load %arg11[%c0_26, %c0_27] : memref<1x16xf32, #tpu.memory_space<vmem>>, vector<1x16xf32>
    %34 = vector.broadcast %33 : vector<1x16xf32> to vector<4x16xf32>
    %35 = arith.addf %32, %34 : vector<4x16xf32>
    %36 = tpu.iota {dimensions = array<i32: 1>} : vector<4x16xi32>
    %cst_28 = arith.constant -1.000000e+01 : f32
    %cst_29 = arith.constant 2.000000e+00 : f32
    %37 = vector.broadcast %cst_28 : f32 to vector<4x16xf32>
    %38 = arith.maximumf %37, %35 : vector<4x16xf32>
    %39 = vector.broadcast %cst_29 : f32 to vector<4x16xf32>
    %40 = arith.minimumf %39, %38 : vector<4x16xf32>
    %c8_i32 = arith.constant 8 : i32
    %41 = vector.broadcast %c8_i32 : i32 to vector<4x16xi32>
    %42 = arith.cmpi sge, %36, %41 : vector<4x16xi32>
    %43 = arith.select %42, %40, %35 : vector<4x16xi1>, vector<4x16xf32>
    %c0_30 = arith.constant 0 : index
    %c0_31 = arith.constant 0 : index
    %44 = vector.load %arg12[%c0_30, %c0_31] : memref<4x16xf32, #tpu.memory_space<vmem>>, vector<4x16xf32>
    tpu.vector_store %arg12[%c0_30, %c0_31], %43 {strides = array<i32>} : memref<4x16xf32, #tpu.memory_space<vmem>>, vector<4x16xf32>,
    return
  }
  func.func @transform_0(%arg0: i32) -> (i32, i32) {
    %c0_i32 = arith.constant 0 : i32
    %c0_i32_0 = arith.constant 0 : i32
    return %arg0, %c0_i32 : i32, i32
  }
  func.func @transform_1(%arg0: i32) -> (i32, i32) {
    %c0_i32 = arith.constant 0 : i32
    %c0_i32_0 = arith.constant 0 : i32
    return %arg0, %c0_i32 : i32, i32
  }
  func.func @transform_2(%arg0: i32) -> (i32, i32) {
    %c0_i32 = arith.constant 0 : i32
    %c0_i32_0 = arith.constant 0 : i32
    %c0_i32_1 = arith.constant 0 : i32
    return %c0_i32, %c0_i32_0 : i32, i32
  }
  func.func @transform_3(%arg0: i32) -> (i32, i32) {
    %c0_i32 = arith.constant 0 : i32
    %c0_i32_0 = arith.constant 0 : i32
    %c0_i32_1 = arith.constant 0 : i32
    return %c0_i32, %c0_i32_0 : i32, i32
  }
  func.func @transform_4(%arg0: i32) -> (i32, i32) {
    %c0_i32 = arith.constant 0 : i32
    %c0_i32_0 = arith.constant 0 : i32
    %c0_i32_1 = arith.constant 0 : i32
    return %c0_i32, %c0_i32_0 : i32, i32
  }
  func.func @transform_5(%arg0: i32) -> (i32, i32) {
    %c0_i32 = arith.constant 0 : i32
    %c0_i32_0 = arith.constant 0 : i32
    %c0_i32_1 = arith.constant 0 : i32
    return %c0_i32, %c0_i32_0 : i32, i32
  }
  func.func @transform_6(%arg0: i32) -> (i32, i32) {
    %c0_i32 = arith.constant 0 : i32
    %c0_i32_0 = arith.constant 0 : i32
    %c0_i32_1 = arith.constant 0 : i32
    return %c0_i32, %c0_i32_0 : i32, i32
  }
  func.func @transform_7(%arg0: i32) -> (i32, i32) {
    %c0_i32 = arith.constant 0 : i32
    %c0_i32_0 = arith.constant 0 : i32
    %c0_i32_1 = arith.constant 0 : i32
    return %c0_i32, %c0_i32_0 : i32, i32
  }
  func.func @transform_8(%arg0: i32) -> (i32, i32) {
    %c0_i32 = arith.constant 0 : i32
    %c0_i32_0 = arith.constant 0 : i32
    %c0_i32_1 = arith.constant 0 : i32
    return %c0_i32, %c0_i32_0 : i32, i32
  }
  func.func @transform_9(%arg0: i32) -> (i32, i32) {
    %c0_i32 = arith.constant 0 : i32
    %c0_i32_0 = arith.constant 0 : i32
    %c0_i32_1 = arith.constant 0 : i32
    return %c0_i32, %c0_i32_0 : i32, i32
  }
  func.func @transform_10(%arg0: i32) -> (i32, i32) {
    %c0_i32 = arith.constant 0 : i32
    %c0_i32_0 = arith.constant 0 : i32
    %c0_i32_1 = arith.constant 0 : i32
    return %c0_i32, %c0_i32_0 : i32, i32
  }
  func.func @transform_11(%arg0: i32) -> (i32, i32) {
    %c0_i32 = arith.constant 0 : i32
    %c0_i32_0 = arith.constant 0 : i32
    return %arg0, %c0_i32 : i32, i32
  }
}

</mosaic_0001>

<bundles_post_ra>
// kernel: clas_encoder_forward.1
= control target key start
LH: loop header
LB: loop body
LE: loop exit
PB: predicated region body
PF: predicated region fallthrough
CT: control target
= control target key end

     0   :  { %16 = vsyncpa [#allocation3], 0  ;;  %s715_s0 = inlined_call_operand.hbm [shape: f32[4,12], index: 0, kind: input, shape index: {}]   ;;  %s716_s1 = inlined_call_operand.hbm [shape: f32[4,4], index: 1, kind: input, shape index: {}]   ;;  %s717_s2 = inlined_call_operand.hbm [shape: bf16[12,32], index: 2, kind: input, shape index: {}]   ;;  %s718_s3 = inlined_call_operand.hbm [shape: bf16[4,32], index: 3, kind: input, shape index: {}]   ;;  %s719_s4 = inlined_call_operand.hbm [shape: f32[1,32], index: 4, kind: input, shape index: {}]   ;;  %s720_s5 = inlined_call_operand.vmem [shape: bf16[32,32], index: 5, kind: input, shape index: {}]   ;;  %s721_s6 = inlined_call_operand.hbm [shape: f32[1,32], index: 6, kind: input, shape index: {}]   ;;  %s722_s7 = inlined_call_operand.vmem [shape: bf16[32,32], index: 7, kind: input, shape index: {}]   ;;  %s723_s8 = inlined_call_operand.hbm [shape: f32[1,32], index: 8, kind: input, shape index: {}]   ;;  %s724_s9 = inlined_call_operand.vmem [shape: bf16[32,16], index: 9, kind: input, shape index: {}]   ;;  %s725_s10 = inlined_call_operand.hbm [shape: f32[1,16], index: 10, kind: input, shape index: {}]   ;;  %s726_s11 = inlined_call_operand.vmem [shape: f32[4,16], index: 11, kind: output, shape index: {}]  }
   0x1   :  { %17 = vsyncpa [#allocation5], 0 }
   0x2   :  { %18 = vsyncpa [#allocation8], 0 }
   0x3   :  { %19 = vsyncpa [#allocation11], 0  ;;  %s37_s19 = sshll.u32 %s716_s1, 4  ;;  %s38_s19 = int_to_ptr.hbm [resolvable:$true] %s37_s19 }
   0x4   :  { %20 = vsyncpa [#allocation14], 0  ;;  %s597_s20 = smov [#allocation4]   ;;  %s61_s24 = sshll.u32 %s718_s3, 4  ;;  %s62_s24 = int_to_ptr.hbm [resolvable:$true] %s61_s24 }
   0x5   :  { %s39_s21 = sshll.u32 %s597_s20, 4  ;;  %s598_s25 = smov [#allocation7]   ;;  %s40_s21 = int_to_ptr.vmem [resolvable:$true] %s39_s21 }
   0x6   :  { %42 = dma.hbm_to_vmem [thread:$0]  %s38_s19, 64, %s40_s21, [#allocation5]  }
   0x7   :  { %s63_s26 = sshll.u32 %s598_s25, 4  ;;  %s85_s29 = sshll.u32 %s721_s6, 4  ;;  %s64_s26 = int_to_ptr.vmem [resolvable:$true] %s63_s26  ;;  %s86_s29 = int_to_ptr.hbm [resolvable:$true] %s85_s29 }
   0x8   :  { %66 = dma.hbm_to_vmem [thread:$0]  %s62_s24, 32, %s64_s26, [#allocation8]  }
   0x9   :  { %s26_s12 = sshll.u32 %s715_s0, 4  ;;  %s599_s13 = smov [#allocation10]   ;;  %s27_s12 = int_to_ptr.hbm [resolvable:$true] %s26_s12 }
   0xa   :  { %s87_s14 = sshll.u32 %s599_s13, 4  ;;  %s600_s3 = smov [#allocation2]   ;;  %s88_s14 = int_to_ptr.vmem [resolvable:$true] %s87_s14 }
   0xb   :  { %90 = dma.hbm_to_vmem [thread:$0]  %s86_s29, 16, %s88_s14, [#allocation11]  }
   0xc   :  { %s28_s15 = sshll.u32 %s600_s3, 4  ;;  %s47_s18 = sshll.u32 %s717_s2, 4  ;;  %s29_s15 = int_to_ptr.vmem [resolvable:$true] %s28_s15  ;;  %s48_s18 = int_to_ptr.hbm [resolvable:$true] %s47_s18 }
   0xd   :  { %31 = dma.hbm_to_vmem [thread:$0]  %s27_s12, 64, %s29_s15, [#allocation3]  }
   0xe   :  { %s601_s6 = smov [#allocation6]   ;;  %s72_s0 = sshll.u32 %s719_s4, 4  ;;  %s73_s0 = int_to_ptr.hbm [resolvable:$true] %s72_s0 }
   0xf   :  { %s49_s19 = sshll.u32 %s601_s6, 4  ;;  %s602_s22 = smov 64   ;;  %s50_s19 = int_to_ptr.vmem [resolvable:$true] %s49_s19 }
  0x10   :  { %s603_s23 = smov 4   ;;  %s604_s24 = smov [#allocation9]  }
  0x11   :  { %55 = dma.hbm_to_vmem [thread:$0]  %s48_s18, 128, %s50_s19, [#allocation5], %s602_s22, %s602_s22, %s603_s23  }
  0x12   :  { %s74_s25 = sshll.u32 %s604_s24, 4  ;;  %s98_s2 = sshll.u32 %s723_s8, 4  ;;  %s75_s25 = int_to_ptr.vmem [resolvable:$true] %s74_s25  ;;  %s99_s2 = int_to_ptr.hbm [resolvable:$true] %s98_s2 }
  0x13   :  { %77 = dma.hbm_to_vmem [thread:$0]  %s73_s0, 16, %s75_s25, [#allocation8]  }
  0x14   :  { %s111_s1 = sshll.u32 %s725_s10, 4  ;;  %s605_s30 = smov [#allocation12]   ;;  %s112_s1 = int_to_ptr.hbm [resolvable:$true] %s111_s1 }
  0x15   :  { %s100_s12 = sshll.u32 %s605_s30, 4  ;;  %s606_s4 = smov [#allocation13]   ;;  %s101_s12 = int_to_ptr.vmem [resolvable:$true] %s100_s12 }
  0x16   :  { %103 = dma.hbm_to_vmem [thread:$0]  %s99_s2, 16, %s101_s12, [#allocation11]  }
  0x17   :  { %s113_s13 = sshll.u32 %s606_s4, 4  ;;  %s114_s13 = int_to_ptr.vmem [resolvable:$true] %s113_s13 }
  0x18   :  { %116 = dma.hbm_to_vmem [thread:$0]  %s112_s1, 16, %s114_s13, [#allocation14]  }
  0x19   :  { %587 = dma.done.wait [#allocation3], 64  }
  0x1a   :  { %588 = vsyncadd [#allocation3], 4294967232 }
  0x1b   :  { %589 = dma.done.wait [#allocation5], 192  }
  0x1c   :  { %590 = vsyncadd [#allocation5], 4294967104 }
  0x1d   :  { %591 = dma.done.wait [#allocation8], 48  }
  0x1e   :  { %592 = vsyncadd [#allocation8], 4294967248 }
  0x1f   :  { %593 = dma.done.wait [#allocation11], 32  }
  0x20   :  { %594 = vsyncadd [#allocation11], 4294967264 }
  0x21   :  { %595 = dma.done.wait [#allocation14], 16  }
  0x22   :  { %596 = vsyncadd [#allocation14], 4294967280  ;;  %vm161_vm0 = vcmask 1041408   ;;  %vm187_vm1 = vcmask 1045504   ;;  %v156_v0 = vld [vmem:[#allocation7] sm:$0x3]  ;;  %v324_v37 = vlaneseq }
  0x23   :  { %v344_v1 = vld [vmem:[#allocation6] sm:$0xf]  ;;  %v374_v2 = vld [vmem:[#allocation6] sm:$0x30]  ;;  %v163_v3 = vsel %vm161_vm0, %v156_v0, 0  ;;  %vm157_vm2 = vcmask 31744  }
  0x24   :  { %v345_v4 = vor.u32 %v374_v2, %v344_v1  ;;  %v154_v5 = vld [vmem:[#allocation4] sm:$0xf]  ;;  %v150_v6 = vld [vmem:[#allocation2] sm:$0xf]  ;;  %172 = vmatpush.bf16.msra.mxu0 %v163_v3  ;;  %vm183_vm3 = vcmask 97280   ;;  %v376_v10 = vld [vmem:[%s720_s5 + $0x8] sm:$0xff] }
  0x25   :  { %v155_v7 = vpack.c.bf16 %v154_v5, %v154_v5  ;;  %v151_v9 = vpack.c.bf16 %v150_v6, %v150_v6  ;;  %241 = vmatpush.bf16.msra.mxu2 %v376_v10  ;;  %v375_v11 = vld [vmem:[%s720_s5] sm:$0xff]  ;;  %v391_v13 = vld [vmem:[#allocation9] ss:$0 sm:$0xff]  ;;  %vm231_vm4 = vcmask 261120   ;;  %v378_v21 = vld [vmem:[%s722_s7 + $0x8] sm:$0xff]  ;;  %v325_v40 = vand.u32 127, %v324_v37 }
  0x26   :  { %v189_v8 = vsel %vm187_vm1, %v345_v4, 0  ;;  %279 = vmatpush.bf16.msra.mxu3 %v378_v21  ;;  %v377_v22 = vld [vmem:[%s722_s7] sm:$0xff]  ;;  %v380_v23 = vld [vmem:[%s724_s9 + $0x8] sm:$0xff]  ;;  %v392_v25 = vld [vmem:[#allocation10] ss:$0 sm:$0xff]  ;;  %vm330_vm6 = vcmask 125952  }
  0x27   :  { %198 = vmatpush.bf16.msra.mxu1 %v189_v8  ;;  %341 = vmatmul.msk.bf16.vlgmr.msra.gmra.mxu0 %vm157_vm2, %v155_v7  ;;  %v379_v24 = vld [vmem:[%s724_s9] sm:$0xff]  ;;  %v393_v31 = vld [vmem:[#allocation12] ss:$0 sm:$0xff]  ;;  %v394_v38 = vld [vmem:[#allocation13] ss:$0 sm:$0xff]  ;;  %vm328_vm5 = vcmp.ge.s32.totalorder %v325_v40, 8 }
  0x28   :  { %317 = vmatpush.bf16.msrb.mxu0 %v380_v23 }
  0x29   :  { %242 = vmatpush.bf16.msra.mxu2 %v375_v11 }
  0x2a   :  { %346 = vmatmul.msk.bf16.vlgmr.msra.gmra.mxu1 %vm183_vm3, %v151_v9  ;;  %280 = vmatpush.bf16.msra.mxu3 %v377_v22 }
  0x2c   :  { %318 = vmatpush.bf16.msrb.mxu0 %v379_v24 }
  0xa4   :  { %v174_v12 = vpop.f32.mrf.mxu0 }
  0xa7   :  { %v200_v14 = vpop.f32.mrf.mxu1 }
  0xa8   :  { %v201_v15 = vadd.f32 %v200_v14, %v174_v12 }
  0xaa   :  { %v208_v16 = vadd.f32 %v391_v13, %v201_v15 }
  0xac   :  { %v209_v17 = vmax.f32 %v208_v16, 0.0  ;;  %v176_v18 = vpop.f32.mrf.mxu0 }
  0xae   :  { %v210_v19 = vpack.c.bf16 %v209_v17, %v209_v17 }
  0xaf   :  { %v202_v20 = vpop.f32.mrf.mxu1 }
  0xb0   :  { %355 = vmatmul.msk.bf16.vlgmr.msra.gmra.mxu2 %vm231_vm4, %v210_v19 }
 0x133   :  { %v244_v26 = vpop.f32.mrf.mxu2 }
 0x134   :  { %v245_v27 = vadd.f32 %v392_v25, %v244_v26 }
 0x136   :  { %v248_v28 = vmax.f32 %v245_v27, 0.0 }
 0x138   :  { %v249_v29 = vpack.c.bf16 %v248_v28, %v248_v28 }
 0x13a   :  { %364 = vmatmul.msk.bf16.vlgmr.msra.gmra.mxu3 %vm231_vm4, %v249_v29 }
 0x13b   :  { %v246_v30 = vpop.f32.mrf.mxu2 }
 0x1bd   :  { %v282_v32 = vpop.f32.mrf.mxu3 }
 0x1be   :  { %v283_v33 = vadd.f32 %v393_v31, %v282_v32 }
 0x1c0   :  { %v286_v34 = vmax.f32 %v283_v33, 0.0 }
 0x1c2   :  { %v287_v35 = vpack.c.bf16 %v286_v34, %v286_v34 }
 0x1c4   :  { %373 = vmatmul.msk.bf16.vlgmr.msrb.gmra.mxu0 %vm231_vm4, %v287_v35 }
 0x1c5   :  { %v284_v36 = vpop.f32.mrf.mxu3 }
 0x241   :  { %v320_v39 = vpop.f32.mrf.mxu0 }
 0x242   :  { %v321_v41 = vadd.f32 %v394_v38, %v320_v39 }
 0x244   :  { %v326_v42 = vmax.f32 %v321_v41, -10.0 }
 0x246   :  { %v327_v43 = vmin.f32 %v326_v42, 2.0 }
 0x248   :  { %v329_v44 = vsel %vm328_vm5, %v327_v43, %v321_v41 }
 0x249   :  { %331 = vst.msk [vmem:[%s726_s11] sm:$0xf] %vm330_vm6, %v329_v44  ;;  %v322_v45 = vpop.f32.mrf.mxu0 }
 0x24a   :  { %336 = vsyncpa [#allocation3], 1 }
 0x24b   :  { %337 = vsyncpa [#allocation5], 1 }
 0x24c   :  { %338 = vsyncpa [#allocation8], 1 }
 0x24d   :  { %339 = vsyncpa [#allocation11], 1 }
 0x24e   :  { %340 = vsyncpa [#allocation14], 1 }

</bundles_post_ra>
